<compile_context>
chip_gen: v7x
topology: tpu7x:2x2x1
jax: 0.10.0
libtpu: 0.0.40
codegen_flags: <defaults>
</compile_context>

<pallas_src>
import functools

import jax
import jax.numpy as jnp
import numpy as np
from jax.experimental import pallas as pl
from jax.experimental.pallas import tpu as pltpu


def _conv_power_kernel(x_ref, t0_ref, t1_ref, y_ref, scale_ref,
                       carry_ref, sums_ref, *, m, rows, block):
    """One (rows, block) tile of the overlap-save Toeplitz convolution.

    x_ref:     (rows, block)   dry signal tile, time row-major
    t0_ref:    (block, block)  in-block Toeplitz taps
    t1_ref:    (block, block)  carry-band taps (previous block of samples)
    y_ref:     (rows, block)   wet (unscaled) output tile
    scale_ref: (8, 128)        per-clip power-retention scale (broadcast)
    carry_ref: (1, block)      VMEM scratch: last row of the previous tile
    sums_ref:  (2,)            SMEM scratch: [sum(x*x), sum(y*y)]
    """
    t = pl.program_id(1)
    n_t = pl.num_programs(1)

    @pl.when(t == 0)
    def _():
        carry_ref[...] = jnp.zeros_like(carry_ref)
        sums_ref[0] = jnp.float32(0.0)
        sums_ref[1] = jnp.float32(0.0)

    x = x_ref[...]                                     # (rows, block) f32
    # Row r needs the previous `block` samples, i.e. row r-1; for the first
    # row of the tile that is the carry from the previous tile (zeros at t=0).
    x_prev = jnp.concatenate([carry_ref[...], x[:-1, :]], axis=0)

    y = (jnp.dot(x, t0_ref[...], preferred_element_type=jnp.float32)
         + jnp.dot(x_prev, t1_ref[...], preferred_element_type=jnp.float32))

    # Zero samples past the true signal length so the right zero-padding tail
    # contributes neither to the output nor to the output power.
    row_i = jax.lax.broadcasted_iota(jnp.int32, (rows, block), 0)
    lane_i = jax.lax.broadcasted_iota(jnp.int32, (rows, block), 1)
    global_i = (t * rows + row_i) * block + lane_i
    y = jnp.where(global_i < m, y, 0.0)

    y_ref[...] = y
    sums_ref[0] += jnp.sum(x * x)                      # padded x is zero -> ok
    sums_ref[1] += jnp.sum(y * y)
    carry_ref[...] = x[rows - 1:rows, :]

    @pl.when(t == n_t - 1)
    def _():
        pb = sums_ref[0]
        pa = sums_ref[1]
        # dot(x,x)/m over dot(y,y)/m: the 1/m cancels.  Guard all-zero output
        # (the PyTorch reference would emit NaN there).
        scale = jnp.where(pa > 0.0, jnp.sqrt(pb / pa), jnp.float32(0.0))
        scale_ref[...] = jnp.zeros((8, 128), jnp.float32) + scale


def _scale_clamp_kernel(scale_ref, y_ref, o_ref):
    s = scale_ref[0, 0]
    o_ref[...] = jnp.clip(y_ref[...] * s, -1.0, 1.0)


def reverberate(x, rir, *, block=128, rows_per_tile=8):
    """x: (batch, m) or (m,) float32 dry signal(s); rir: (n,) float32 impulse
    response.  Returns power-retained, clamped reverberated signal(s)."""
    squeeze = (x.ndim == 1)
    if squeeze:
        x = x[None, :]
    batch, m = x.shape
    n = rir.shape[-1]
    if n > block:
        # TODO(synk): RIRs longer than `block` taps need extra carry bands or
        # (better, for real room IRs) an XLA FFT convolution outside the kernel.
        raise NotImplementedError("RIR longer than the conv block size")

    x = x.astype(jnp.float32)
    rir = rir.astype(jnp.float32)

    tile = rows_per_tile * block
    m_pad = ((m + tile - 1) // tile) * tile
    r_total = m_pad // block
    num_tiles = r_total // rows_per_tile

    x_blocks = jnp.pad(x, ((0, 0), (0, m_pad - m))).reshape(batch, r_total, block)

    # Banded Toeplitz tap matrices for the overlap-save block convolution:
    #   y[row r] = x[row r] @ T0 + x[row r-1] @ T1
    d = jnp.arange(block)[None, :] - jnp.arange(block)[:, None]      # j - i
    hp = jnp.zeros((block,), jnp.float32).at[:n].set(rir)
    t0 = jnp.where((d >= 0) & (d < n), hp[jnp.clip(d, 0, block - 1)], 0.0)
    t1 = jnp.where(d + block < n, hp[jnp.clip(d + block, 0, block - 1)], 0.0)

    kernel1 = functools.partial(_conv_power_kernel,
                                m=m, rows=rows_per_tile, block=block)

    y_blocks, scale_blk = pl.pallas_call(
        kernel1,
        out_shape=(
            jax.ShapeDtypeStruct((batch, r_total, block), jnp.float32),
            jax.ShapeDtypeStruct((batch, 8, 128), jnp.float32),
        ),
        grid_spec=pltpu.PrefetchScalarGridSpec(
            num_scalar_prefetch=0,
            grid=(batch, num_tiles),
            in_specs=[
                pl.BlockSpec((None, rows_per_tile, block), lambda b, t: (b, t, 0)),
                pl.BlockSpec((block, block), lambda b, t: (0, 0)),   # T0 resident
                pl.BlockSpec((block, block), lambda b, t: (0, 0)),   # T1 resident
            ],
            out_specs=(
                pl.BlockSpec((None, rows_per_tile, block), lambda b, t: (b, t, 0)),
                pl.BlockSpec((None, 8, 128), lambda b, t: (b, 0, 0)),
            ),
            scratch_shapes=[
                pltpu.VMEM((1, block), jnp.float32),   # carry row
                pltpu.SMEM((2,), jnp.float32),         # power accumulators
            ],
        ),
        compiler_params=pltpu.CompilerParams(
            dimension_semantics=("parallel", "arbitrary")),
    )(x_blocks, t0, t1)

    out_blocks = pl.pallas_call(
        _scale_clamp_kernel,
        out_shape=jax.ShapeDtypeStruct((batch, r_total, block), jnp.float32),
        grid_spec=pltpu.PrefetchScalarGridSpec(
            num_scalar_prefetch=0,
            grid=(batch, num_tiles),
            in_specs=[
                pl.BlockSpec((None, 8, 128), lambda b, t: (b, 0, 0)),
                pl.BlockSpec((None, rows_per_tile, block), lambda b, t: (b, t, 0)),
            ],
            out_specs=pl.BlockSpec((None, rows_per_tile, block),
                                   lambda b, t: (b, t, 0)),
        ),
        compiler_params=pltpu.CompilerParams(
            dimension_semantics=("parallel", "parallel")),
        input_output_aliases={1: 0},   # scale+clamp y in place
    )(scale_blk, y_blocks)

    out = out_blocks.reshape(batch, m_pad)[:, :m]
    return out[0] if squeeze else out


def _reference(x, rir):
    """Pure-JAX reference mirroring the PyTorch forward (per clip)."""
    m = x.shape[-1]

    def one(xi):
        y = jnp.convolve(xi, rir, mode="full")[:m]
        pb = jnp.dot(xi, xi) / m
        pa = jnp.dot(y, y) / m
        return jnp.clip(y * jnp.sqrt(pb / pa), -1.0, 1.0)

    return jax.vmap(one)(x) if x.ndim == 2 else one(x)


if __name__ == "__main__":
    key = jax.random.PRNGKey(0)
    k_x, k_h = jax.random.split(key)

    batch = 2     # several clips per pallas_call amortize launch/grid overhead
    m = 2000      # not a multiple of the tile -> exercises the tail masking
    n = 63        # synthetic RIR length

    # TODO(synk): the module picks a random RIR loaded from wav files at each
    # forward; a single deterministic synthetic RIR (decaying noise) is used.
    x = jax.random.uniform(k_x, (batch, m), jnp.float32, minval=-0.8, maxval=0.8)
    decay = jnp.exp(-jnp.arange(n, dtype=jnp.float32) / 8.0)
    rir = jax.random.normal(k_h, (n,), jnp.float32) * decay
    rir = rir.at[0].set(1.0)

    y = jax.jit(reverberate)(x, rir)
    jax.block_until_ready(y)

    y_ref = _reference(x, rir)
    np.testing.assert_allclose(np.asarray(y), np.asarray(y_ref),
                               rtol=2e-4, atol=2e-4)
    print("KERNEL_OK")
</pallas_src>

<mosaic_0001>
module attributes {stable_mosaic.version = 11 : i64} {
  func.func @_scale_clamp_kernel(%arg0: i32, %arg1: i32, %arg2: memref<1x8x128xf32, #tpu.memory_space<vmem>>, %arg3: memref<1x8x128xf32, #tpu.memory_space<vmem>>, %arg4: memref<1x8x128xf32, #tpu.memory_space<vmem>>) attributes {dimension_semantics = [#tpu.dimension_semantics<parallel>, #tpu.dimension_semantics<parallel>], iteration_bounds = array<i64: 2, 2>, scalar_prefetch = 0 : i64, scratch_operands = 0 : i64, tpu.core_type = #tpu.core_type<tc>, window_params = [{transform_indices = @transform_0, window_bounds = array<i64: 1, 8, 128>}, {transform_indices = @transform_1, window_bounds = array<i64: 1, 8, 128>}, {transform_indices = @transform_2, window_bounds = array<i64: 1, 8, 128>}]} {
    %c0 = arith.constant 0 : index
    %c0_0 = arith.constant 0 : index
    %c0_1 = arith.constant 0 : index
    %0 = vector.load %arg2[%c0, %c0_0, %c0_1] : memref<1x8x128xf32, #tpu.memory_space<vmem>>, vector<1x1x1xf32>
    %1 = vector.extract %0[0, 0, 0] : f32 from vector<1x1x1xf32>
    %c0_2 = arith.constant 0 : index
    %c0_3 = arith.constant 0 : index
    %c0_4 = arith.constant 0 : index
    %2 = vector.load %arg3[%c0_2, %c0_3, %c0_4] : memref<1x8x128xf32, #tpu.memory_space<vmem>>, vector<1x8x128xf32>
    %3 = vector.shape_cast %2 : vector<1x8x128xf32> to vector<8x128xf32>
    %4 = vector.broadcast %1 : f32 to vector<8x128xf32>
    %5 = arith.mulf %3, %4 : vector<8x128xf32>
    %cst = arith.constant -1.000000e+00 : f32
    %cst_5 = arith.constant 1.000000e+00 : f32
    %6 = vector.broadcast %cst : f32 to vector<8x128xf32>
    %7 = arith.maximumf %6, %5 : vector<8x128xf32>
    %8 = vector.broadcast %cst_5 : f32 to vector<8x128xf32>
    %9 = arith.minimumf %8, %7 : vector<8x128xf32>
    %c0_6 = arith.constant 0 : index
    %c0_7 = arith.constant 0 : index
    %c0_8 = arith.constant 0 : index
    %10 = vector.load %arg4[%c0_6, %c0_7, %c0_8] : memref<1x8x128xf32, #tpu.memory_space<vmem>>, vector<1x8x128xf32>
    %11 = vector.shape_cast %10 : vector<1x8x128xf32> to vector<8x128xf32>
    %12 = vector.shape_cast %9 : vector<8x128xf32> to vector<1x8x128xf32>
    tpu.vector_store %arg4[%c0_6, %c0_7, %c0_8], %12 {strides = array<i32>} : memref<1x8x128xf32, #tpu.memory_space<vmem>>, vector<1x8x128xf32>,
    return
  }
  func.func @transform_0(%arg0: i32, %arg1: i32) -> (i32, i32, i32) {
    %c0_i32 = arith.constant 0 : i32
    %c0_i32_0 = arith.constant 0 : i32
    %c0_i32_1 = arith.constant 0 : i32
    return %arg0, %c0_i32, %c0_i32_0 : i32, i32, i32
  }
  func.func @transform_1(%arg0: i32, %arg1: i32) -> (i32, i32, i32) {
    %c0_i32 = arith.constant 0 : i32
    %c0_i32_0 = arith.constant 0 : i32
    return %arg0, %arg1, %c0_i32 : i32, i32, i32
  }
  func.func @transform_2(%arg0: i32, %arg1: i32) -> (i32, i32, i32) {
    %c0_i32 = arith.constant 0 : i32
    %c0_i32_0 = arith.constant 0 : i32
    return %arg0, %arg1, %c0_i32 : i32, i32, i32
  }
}

module attributes {stable_mosaic.version = 11 : i64} {
  func.func @_conv_power_kernel(%arg0: i32, %arg1: i32, %arg2: memref<1x8x128xf32, #tpu.memory_space<vmem>>, %arg3: memref<128x128xf32, #tpu.memory_space<vmem>>, %arg4: memref<128x128xf32, #tpu.memory_space<vmem>>, %arg5: memref<1x8x128xf32, #tpu.memory_space<vmem>>, %arg6: memref<1x8x128xf32, #tpu.memory_space<vmem>>, %arg7: memref<1x128xf32, #tpu.memory_space<vmem>>, %arg8: memref<2xf32, #tpu.memory_space<smem>>) attributes {dimension_semantics = [#tpu.dimension_semantics<parallel>, #tpu.dimension_semantics<arbitrary>], iteration_bounds = array<i64: 2, 2>, scalar_prefetch = 0 : i64, scratch_operands = 2 : i64, tpu.core_type = #tpu.core_type<tc>, window_params = [{transform_indices = @transform_0, window_bounds = array<i64: 1, 8, 128>}, {pipeline_mode = #tpu.pipeline_mode<synchronous>, transform_indices = @transform_1, window_bounds = array<i64: 128, 128>}, {pipeline_mode = #tpu.pipeline_mode<synchronous>, transform_indices = @transform_2, window_bounds = array<i64: 128, 128>}, {transform_indices = @transform_3, window_bounds = array<i64: 1, 8, 128>}, {transform_indices = @transform_4, window_bounds = array<i64: 1, 8, 128>}]} {
    %c0_i32 = arith.constant 0 : i32
    %0 = arith.cmpi eq, %arg1, %c0_i32 : i32
    %1 = arith.extui %0 : i1 to i32
    %c0_i32_0 = arith.constant 0 : i32
    %2 = arith.cmpi ne, %1, %c0_i32_0 : i32
    scf.if %2 {
      %cst_22 = arith.constant 0.000000e+00 : f32
      %49 = vector.broadcast %cst_22 : f32 to vector<1x128xf32>
      %c0_23 = arith.constant 0 : index
      %c0_24 = arith.constant 0 : index
      %50 = vector.load %arg7[%c0_23, %c0_24] : memref<1x128xf32, #tpu.memory_space<vmem>>, vector<1x128xf32>
      tpu.vector_store %arg7[%c0_23, %c0_24], %49 {strides = array<i32>} : memref<1x128xf32, #tpu.memory_space<vmem>>, vector<1x128xf32>,
      %cst_25 = arith.constant 0.000000e+00 : f32
      %c0_26 = arith.constant 0 : index
      %51 = memref.load %arg8[%c0_26] : memref<2xf32, #tpu.memory_space<smem>>
      memref.store %cst_25, %arg8[%c0_26] : memref<2xf32, #tpu.memory_space<smem>>
      %cst_27 = arith.constant 0.000000e+00 : f32
      %c1_28 = arith.constant 1 : index
      %52 = memref.load %arg8[%c1_28] : memref<2xf32, #tpu.memory_space<smem>>
      memref.store %cst_27, %arg8[%c1_28] : memref<2xf32, #tpu.memory_space<smem>>
    } else {
    }
    %c0 = arith.constant 0 : index
    %c0_1 = arith.constant 0 : index
    %c0_2 = arith.constant 0 : index
    %3 = vector.load %arg2[%c0, %c0_1, %c0_2] : memref<1x8x128xf32, #tpu.memory_space<vmem>>, vector<1x8x128xf32>
    %4 = vector.shape_cast %3 : vector<1x8x128xf32> to vector<8x128xf32>
    %c0_3 = arith.constant 0 : index
    %c0_4 = arith.constant 0 : index
    %5 = vector.load %arg7[%c0_3, %c0_4] : memref<1x128xf32, #tpu.memory_space<vmem>>, vector<1x128xf32>
    %6 = vector.extract_strided_slice %4 {offsets = [0, 0], sizes = [7, 128], strides = [1, 1]} : vector<8x128xf32> to vector<7x128xf32>
    %7 = tpu.concatenate %5, %6 in 0 : vector<1x128xf32>, vector<7x128xf32> -> vector<8x128xf32>
    %c0_5 = arith.constant 0 : index
    %c0_6 = arith.constant 0 : index
    %8 = vector.load %arg3[%c0_5, %c0_6] : memref<128x128xf32, #tpu.memory_space<vmem>>, vector<128x128xf32>
    %cst = arith.constant dense<0.000000e+00> : vector<8x128xf32>
    %9 = tpu.matmul %4, %8, %cst {dimension_numbers = #tpu.dot_dimension_numbers<[1], [0], [0], [1], [0, 0, 1, 1], [], []>} : vector<8x128xf32>, vector<128x128xf32>, vector<8x128xf32> -> vector<8x128xf32>
    %c0_7 = arith.constant 0 : index
    %c0_8 = arith.constant 0 : index
    %10 = vector.load %arg4[%c0_7, %c0_8] : memref<128x128xf32, #tpu.memory_space<vmem>>, vector<128x128xf32>
    %cst_9 = arith.constant dense<0.000000e+00> : vector<8x128xf32>
    %11 = tpu.matmul %7, %10, %cst_9 {dimension_numbers = #tpu.dot_dimension_numbers<[1], [0], [0], [1], [0, 0, 1, 1], [], []>} : vector<8x128xf32>, vector<128x128xf32>, vector<8x128xf32> -> vector<8x128xf32>
    %12 = arith.addf %9, %11 : vector<8x128xf32>
    %13 = tpu.iota {dimensions = array<i32: 0>} : vector<8x128xi32>
    %14 = tpu.iota {dimensions = array<i32: 1>} : vector<8x128xi32>
    %c8_i32 = arith.constant 8 : i32
    %15 = arith.muli %arg1, %c8_i32 : i32
    %16 = vector.broadcast %15 : i32 to vector<8x128xi32>
    %17 = arith.addi %16, %13 : vector<8x128xi32>
    %c128_i32 = arith.constant 128 : i32
    %18 = vector.broadcast %c128_i32 : i32 to vector<8x128xi32>
    %19 = arith.muli %17, %18 : vector<8x128xi32>
    %20 = arith.addi %19, %14 : vector<8x128xi32>
    %c2000_i32 = arith.constant 2000 : i32
    %21 = vector.broadcast %c2000_i32 : i32 to vector<8x128xi32>
    %22 = arith.cmpi slt, %20, %21 : vector<8x128xi32>
    %cst_10 = arith.constant 0.000000e+00 : f32
    %23 = vector.broadcast %cst_10 : f32 to vector<8x128xf32>
    %24 = arith.select %22, %12, %23 : vector<8x128xi1>, vector<8x128xf32>
    %c0_11 = arith.constant 0 : index
    %c0_12 = arith.constant 0 : index
    %c0_13 = arith.constant 0 : index
    %25 = vector.load %arg5[%c0_11, %c0_12, %c0_13] : memref<1x8x128xf32, #tpu.memory_space<vmem>>, vector<1x8x128xf32>
    %26 = vector.shape_cast %25 : vector<1x8x128xf32> to vector<8x128xf32>
    %27 = vector.shape_cast %24 : vector<8x128xf32> to vector<1x8x128xf32>
    tpu.vector_store %arg5[%c0_11, %c0_12, %c0_13], %27 {strides = array<i32>} : memref<1x8x128xf32, #tpu.memory_space<vmem>>, vector<1x8x128xf32>,
    %c0_14 = arith.constant 0 : index
    %28 = memref.load %arg8[%c0_14] : memref<2xf32, #tpu.memory_space<smem>>
    %29 = arith.mulf %4, %4 : vector<8x128xf32>
    %30 = vector.shape_cast %29 : vector<8x128xf32> to vector<1x8x128xf32>
    %cst_15 = arith.constant dense<0.000000e+00> : vector<1xf32>
    %31 = vector.multi_reduction <add>, %30, %cst_15 [1, 2] : vector<1x8x128xf32> to vector<1xf32>
    %32 = vector.shape_cast %31 : vector<1xf32> to vector<1x1x1xf32>
    %33 = vector.extract %32[0, 0, 0] : f32 from vector<1x1x1xf32>
    %34 = arith.addf %28, %33 : f32
    %c0_16 = arith.constant 0 : index
    %35 = memref.load %arg8[%c0_16] : memref<2xf32, #tpu.memory_space<smem>>
    memref.store %34, %arg8[%c0_16] : memref<2xf32, #tpu.memory_space<smem>>
    %c1 = arith.constant 1 : index
    %36 = memref.load %arg8[%c1] : memref<2xf32, #tpu.memory_space<smem>>
    %37 = arith.mulf %24, %24 : vector<8x128xf32>
    %38 = vector.shape_cast %37 : vector<8x128xf32> to vector<1x8x128xf32>
    %cst_17 = arith.constant dense<0.000000e+00> : vector<1xf32>
    %39 = vector.multi_reduction <add>, %38, %cst_17 [1, 2] : vector<1x8x128xf32> to vector<1xf32>
    %40 = vector.shape_cast %39 : vector<1xf32> to vector<1x1x1xf32>
    %41 = vector.extract %40[0, 0, 0] : f32 from vector<1x1x1xf32>
    %42 = arith.addf %36, %41 : f32
    %c1_18 = arith.constant 1 : index
    %43 = memref.load %arg8[%c1_18] : memref<2xf32, #tpu.memory_space<smem>>
    memref.store %42, %arg8[%c1_18] : memref<2xf32, #tpu.memory_space<smem>>
    %44 = vector.extract_strided_slice %4 {offsets = [7, 0], sizes = [1, 128], strides = [1, 1]} : vector<8x128xf32> to vector<1x128xf32>
    %c0_19 = arith.constant 0 : index
    %c0_20 = arith.constant 0 : index
    %45 = vector.load %arg7[%c0_19, %c0_20] : memref<1x128xf32, #tpu.memory_space<vmem>>, vector<1x128xf32>
    tpu.vector_store %arg7[%c0_19, %c0_20], %44 {strides = array<i32>} : memref<1x128xf32, #tpu.memory_space<vmem>>, vector<1x128xf32>,
    %c1_i32 = arith.constant 1 : i32
    %46 = arith.cmpi eq, %arg1, %c1_i32 : i32
    %47 = arith.extui %46 : i1 to i32
    %c0_i32_21 = arith.constant 0 : i32
    %48 = arith.cmpi ne, %47, %c0_i32_21 : i32
    scf.if %48 {
      %c0_22 = arith.constant 0 : index
      %49 = memref.load %arg8[%c0_22] : memref<2xf32, #tpu.memory_space<smem>>
      %c1_23 = arith.constant 1 : index
      %50 = memref.load %arg8[%c1_23] : memref<2xf32, #tpu.memory_space<smem>>
      %cst_24 = arith.constant 0.000000e+00 : f32
      %51 = arith.cmpf ogt, %50, %cst_24 : f32
      %52 = arith.divf %49, %50 : f32
      %53 = math.sqrt %52 : f32
      %cst_25 = arith.constant 0.000000e+00 : f32
      %54 = arith.select %51, %53, %cst_25 : f32
      %cst_26 = arith.constant 0.000000e+00 : f32
      %55 = vector.broadcast %cst_26 : f32 to vector<8x128xf32>
      %56 = vector.broadcast %54 : f32 to vector<8x128xf32>
      %57 = arith.addf %55, %56 : vector<8x128xf32>
      %c0_27 = arith.constant 0 : index
      %c0_28 = arith.constant 0 : index
      %c0_29 = arith.constant 0 : index
      %58 = vector.load %arg6[%c0_27, %c0_28, %c0_29] : memref<1x8x128xf32, #tpu.memory_space<vmem>>, vector<1x8x128xf32>
      %59 = vector.shape_cast %58 : vector<1x8x128xf32> to vector<8x128xf32>
      %60 = vector.shape_cast %57 : vector<8x128xf32> to vector<1x8x128xf32>
      tpu.vector_store %arg6[%c0_27, %c0_28, %c0_29], %60 {strides = array<i32>} : memref<1x8x128xf32, #tpu.memory_space<vmem>>, vector<1x8x128xf32>,
    } else {
    }
    return
  }
  func.func @transform_0(%arg0: i32, %arg1: i32) -> (i32, i32, i32) {
    %c0_i32 = arith.constant 0 : i32
    %c0_i32_0 = arith.constant 0 : i32
    return %arg0, %arg1, %c0_i32 : i32, i32, i32
  }
  func.func @transform_1(%arg0: i32, %arg1: i32) -> (i32, i32) {
    %c0_i32 = arith.constant 0 : i32
    %c0_i32_0 = arith.constant 0 : i32
    %c0_i32_1 = arith.constant 0 : i32
    return %c0_i32, %c0_i32_0 : i32, i32
  }
  func.func @transform_2(%arg0: i32, %arg1: i32) -> (i32, i32) {
    %c0_i32 = arith.constant 0 : i32
    %c0_i32_0 = arith.constant 0 : i32
    %c0_i32_1 = arith.constant 0 : i32
    return %c0_i32, %c0_i32_0 : i32, i32
  }
  func.func @transform_3(%arg0: i32, %arg1: i32) -> (i32, i32, i32) {
    %c0_i32 = arith.constant 0 : i32
    %c0_i32_0 = arith.constant 0 : i32
    return %arg0, %arg1, %c0_i32 : i32, i32, i32
  }
  func.func @transform_4(%arg0: i32, %arg1: i32) -> (i32, i32, i32) {
    %c0_i32 = arith.constant 0 : i32
    %c0_i32_0 = arith.constant 0 : i32
    %c0_i32_1 = arith.constant 0 : i32
    return %arg0, %c0_i32, %c0_i32_0 : i32, i32, i32
  }
}

</mosaic_0001>

<bundles_post_ra>
// kernel: reverberate.3
= control target key start
LH: loop header
LB: loop body
LE: loop exit
PB: predicated region body
PF: predicated region fallthrough
CT: control target
= control target key end

     0   :  { %s408_s9 = smov 0   ;;  %s410_s10 = smov 0   ;;  %s459_s0 = inlined_call_operand.vmem [shape: f32[2,8,128], index: 0, kind: input, shape index: {}]   ;;  %s460_s1 = inlined_call_operand.vmem [shape: f32[2,16,128], index: 1, kind: input, shape index: {}, may-alias: {1,2}]   ;;  %s461_s2 = inlined_call_operand.vmem [shape: f32[2,16,128], index: 2, kind: output, shape index: {}, may-alias: {1,2}]  }
   0x1   :  { %s412_s11 = smov 0   ;;  %s414_s12 = smov 0  }
   0x2   :  { %s416_s13 = smov 0  }
   0x3 LB: > { %s21_s14 = sadd.s32 1, %s383_s11  ;;  %s24_s15 = sadd.s32 1, %s387_s12  ;;  %s391_s13 = sphi %s416_s13, %s12_s13   ;;  %s387_s12 = sphi %s414_s12, %s465_s12   ;;  %s383_s11 = sphi %s412_s11, %s464_s11   ;;  %s379_s10 = sphi %s410_s10, %s463_s10   ;;  %s375_s9 = sphi %s408_s9, %s462_s9  }
   0x4   : > { %p22_p0 = scmp.ge.s32.totalorder %s21_s14, 2  ;;  %p302_p1 = scmp.ge.s32.totalorder %s391_s13, 1 }
   0x5   : > { %p140_p2 = scmp.lt.s32.totalorder %s391_s13, 5 }
   0x6   : > { %s467_s14 = smov (%p22_p0, %s21_s14), 0  ;;  %s469_s15 = smov (!%p22_p0, %s24_s15), %s387_s12 }
   0x7   : > { %p141_p3 = pnand %p302_p1, %p140_p2  ;;  %p26_p4 = scmp.ge.s32.totalorder %s469_s15, 2 }
   0x8   : > { %p172_p5 = scmp.lt.s32.totalorder (!%p141_p3), %s379_s10, 1  ;;  %p178_p6 = scmp.lt.s32.totalorder (!%p141_p3), %s375_s9, 1 }
   0x9   : > { %s471_s15 = smov (%p26_p4, %s469_s15), 0  ;;  %144 = sbr.rel (%p141_p3) target bundleno = 76 (0x4c), region = 28 }
  0x10   : > { %s473_s10 = smov (!%p172_p5, %s379_s10), 1  ;;  %s475_s9 = smov (!%p178_p6, %s375_s9), 1 }
  0x11   : > { %s303_s16 = sshll.u32 %s473_s10, 3  ;;  %s304_s20 = sshll.u32 %s473_s10, 1 }
  0x12   : > { %s175_s19 = scalar_lea.vmem %s459_s0, %s303_s16  ;;  %s181_s21 = sadd.s32 %s304_s20, %s475_s9 }
  0x13   : > { %v192_v0 = vld [vmem:[%s175_s19] sm:$0x1]  ;;  %s305_s22 = sshll.u32 %s181_s21, 3 }
  0x14   : > { %311 = vpush %v192_v0  ;;  %s183_s25 = scalar_lea.vmem %s460_s1, %s305_s22  ;;  %s191_s29 = scalar_lea.vmem %s461_s2, %s305_s22 }
  0x15   : > { %v194_v1 = vld [vmem:[%s183_s25] sm:$0xff] }
  0x45   : > { %s312_s26 = spop %311 }
  0x46   : > { %v195_v2 = vstv %s312_s26 }
  0x47   : > { %v196_v3 = vmul.f32 %v195_v2, %v194_v1 }
  0x49   : > { %v308_v4 = vclamps-f32 %v196_v3, 1.0 }
  0x4b   : > { %199 = vst [vmem:[%s191_s29] sm:$0xff] %v308_v4 }
  0x4c PF: > { %s12_s13 = sadd.s32 1, %s391_s13   ;;  %s462_s9 = smov %s383_s11 }
  0x4d   : > { %p9_p7 = scmp.ge.s32.totalorder %s12_s13, 6   ;;  %s463_s10 = smov %s387_s12 }
  0x4e   : > { %s464_s11 = smov %s467_s14  ;;  %s465_s12 = smov %s471_s15 }
  0x4f   :  { %11 = sbr.rel (!%p9_p7) target bundleno = 3 (0x3), region = 61 }

// kernel: reverberate.2
= control target key start
LH: loop header
LB: loop body
LE: loop exit
PB: predicated region body
PF: predicated region fallthrough
CT: control target
= control target key end

     0   :  { %s907_s15 = smov 0   ;;  %s909_s16 = smov 0   ;;  %s1089_s0 = inlined_call_operand.vmem [shape: f32[2,16,128], index: 0, kind: input, shape index: {}]   ;;  %s1090_s1 = inlined_call_operand.vmem [shape: f32[128,128], index: 1, kind: input, shape index: {}]   ;;  %s1091_s2 = inlined_call_operand.vmem [shape: f32[128,128], index: 2, kind: input, shape index: {}]   ;;  %s1092_s3 = inlined_call_operand.vmem [shape: f32[2,16,128], index: 3, kind: output, shape index: {0}]   ;;  %s1093_s4 = inlined_call_operand.vmem [shape: f32[2,8,128], index: 4, kind: output, shape index: {1}]  }
   0x1   :  { %s911_s17 = smov 0   ;;  %s913_s18 = smov 0  }
   0x2   :  { %s915_s19 = smov 0  }
   0x3 LB: > { %s24_s20 = sadd.s32 1, %s867_s17  ;;  %s27_s21 = sadd.s32 1, %s871_s18  ;;  %s875_s19 = sphi %s915_s19, %s15_s19   ;;  %s871_s18 = sphi %s913_s18, %s1097_s18   ;;  %s867_s17 = sphi %s911_s17, %s1096_s17   ;;  %s863_s16 = sphi %s909_s16, %s1095_s16   ;;  %s859_s15 = sphi %s907_s15, %s1094_s15  }
   0x4   : > { %p25_p0 = scmp.ge.s32.totalorder %s24_s20, 2  ;;  %p614_p1 = scmp.ge.s32.totalorder %s875_s19, 1 }
   0x5   : > { %p184_p2 = scmp.lt.s32.totalorder %s875_s19, 5 }
   0x6   : > { %s1099_s20 = smov (%p25_p0, %s24_s20), 0  ;;  %s1101_s21 = smov (!%p25_p0, %s27_s21), %s871_s18 }
   0x7   : > { %p185_p3 = pnand %p614_p1, %p184_p2  ;;  %p29_p4 = scmp.ge.s32.totalorder %s1101_s21, 2 }
   0x8   : > { %p220_p5 = scmp.lt.s32.totalorder (!%p185_p3), %s863_s16, 1  ;;  %p222_p6 = scmp.lt.s32.totalorder (!%p185_p3), %s859_s15, 1 }
   0x9   : > { %s1103_s21 = smov (%p29_p4, %s1101_s21), 0  ;;  %188 = sbr.rel (%p185_p3) target bundleno = 622 (0x26e), region = 32 }
   0xa   : > { %p620_p7 = scmp.ne.s32.totalorder (!%p185_p3), %s859_s15, 0 }
  0x10   : > { %s1105_s16 = smov (!%p220_p5, %s863_s16), 1  ;;  %243 = sbr.rel (%p620_p7) target bundleno = 24 (0x18), region = 36 }
  0x11   : > { %s223_s22 = scalar_select %p222_p6, %s859_s15, 1 }
  0x12   : > { %s615_s23 = sshll.u32 %s1105_s16, 1  ;;  %s619_s24 = sshll.u32 %s1105_s16, 3  ;;  %v877_v0 = vmov (!%p620_p7), 0.0  }
  0x13   : > { %s225_s25 = sadd.s32 %s615_s23, %s223_s22  ;;  %s944_s28 = scalar_lea.vmem %s1093_s4, %s619_s24  ;;  %244 = vst [vmem:[#allocation2] sm:$0x1] (!%p620_p7), %v877_v0 }
  0x14   : > { %s616_s29 = sshll.u32 %s225_s25, 3  ;;  %s878_s10 = smov (!%p620_p7), 0.0  }
  0x15   : > { %s949_s6 = scalar_lea.vmem %s1089_s0, %s616_s29  ;;  %s954_s9 = scalar_lea.vmem %s1092_s3, %s616_s29 }
  0x16   : > { %246 = sst [smem:[#allocation3]] (!%p620_p7), %s878_s10 }
  0x17   : > { %248 = sst [smem:[#allocation3 + $0x1]] %s878_s10 }
  0x18 PF: > { %v272_v1 = vld [vmem:[%s1091_s2] sm:$0xff]  ;;  %v273_v2 = vld [vmem:[%s1091_s2 + $0x8] sm:$0xff]  ;;  %v879_v4 = vmov 0.0|0.0   ;;  %v274_v7 = vld [vmem:[%s1091_s2 + $0x10] sm:$0xff]  ;;  %vm880_vm0 = vmmov 0   ;;  %v881_v12 = vmov 0.0   ;;  %v428_v56 = vlaneseq }
  0x19   : > { %v256_v3 = vld [vmem:[%s1090_s1] sm:$0xff]  ;;  %731 = vmatprep.subr.bf16.mxu1 %v879_v4  ;;  %755 = vmatprep.subr.bf16.mxu0 %v879_v4  ;;  %v732_v5 = vpack.c.bf16 %v273_v2, %v272_v1  ;;  %v257_v6 = vld [vmem:[%s1090_s1 + $0x8] sm:$0xff]  ;;  %v275_v8 = vld [vmem:[%s1091_s2 + $0x18] sm:$0xff]  ;;  %vm254_vm1 = vcmask 1040384   ;;  %s621_s29 = sshll.u32 %s859_s15, 3  ;;  %s440_s30 = sld [smem:[#allocation3]] }
  0x1a   : > { %v756_v9 = vpack.c.bf16 %v257_v6, %v256_v3  ;;  %v258_v10 = vld [vmem:[%s1090_s1 + $0x10] sm:$0xff]  ;;  %v259_v11 = vld [vmem:[%s1090_s1 + $0x18] sm:$0xff]  ;;  %693 = vmatprep.mubr.msk.f32.mxu1 %vm880_vm0, %v881_v12  ;;  %728 = vmatprep.mubr.msk.f32.mxu0 %vm880_vm0, %v881_v12  ;;  %v735_v13 = vpack.c.bf16 %v275_v8, %v274_v7  ;;  %v276_v15 = vld [vmem:[%s1091_s2 + $0x20] sm:$0xff]  ;;  %v429_v57 = vshrl.u32 %v428_v56, 7  ;;  %v433_v58 = vstv %s621_s29  ;;  %p623_p8 = scmp.ne.s32.totalorder %s859_s15, 1 }
  0x1b   : > { %733 = vmatpush3.bf16.msra.mxu1 %v732_v5  ;;  %v759_v14 = vpack.c.bf16 %v259_v11, %v258_v10  ;;  %v277_v16 = vld [vmem:[%s1091_s2 + $0x28] sm:$0xff]  ;;  %v260_v17 = vld [vmem:[%s1090_s1 + $0x20] sm:$0xff]  ;;  %v278_v21 = vld [vmem:[%s1091_s2 + $0x30] sm:$0xff]  ;;  %v431_v60 = vand.u32 127, %v428_v56 }
  0x1c   : > { %757 = vmatpush3.bf16.msra.mxu0 %v756_v9  ;;  %734 = vmatprep.subr.bf16.mxu1 %v879_v4  ;;  %v261_v18 = vld [vmem:[%s1090_s1 + $0x28] sm:$0xff]  ;;  %v738_v19 = vpack.c.bf16 %v277_v16, %v276_v15  ;;  %v279_v22 = vld [vmem:[%s1091_s2 + $0x38] sm:$0xff]  ;;  %v262_v23 = vld [vmem:[%s1090_s1 + $0x30] sm:$0xff]  ;;  %v434_v59 = vadd.s32 %v433_v58, %v429_v57 }
  0x1d   : > { %758 = vmatprep.subr.bf16.mxu0 %v879_v4  ;;  %v762_v20 = vpack.c.bf16 %v261_v18, %v260_v17  ;;  %v263_v24 = vld [vmem:[%s1090_s1 + $0x38] sm:$0xff]  ;;  %v249_v25 = vld [vmem:[%s949_s6] sm:$0xff]  ;;  %v741_v26 = vpack.c.bf16 %v279_v22, %v278_v21  ;;  %v281_v31 = vld [vmem:[%s1091_s2 + $0x48] sm:$0xff] }
  0x1e   : > { %v250_v27 = vld [vmem:[#allocation2] sm:$0x1]  ;;  %v441_v28 = vmul.f32 %v249_v25, %v249_v25  ;;  %v765_v29 = vpack.c.bf16 %v263_v24, %v262_v23  ;;  %v265_v33 = vld [vmem:[%s1090_s1 + $0x48] sm:$0xff]  ;;  %v282_v36 = vld [vmem:[%s1091_s2 + $0x50] sm:$0xff]  ;;  %v252_v53 = vrot.slane %v249_v25, 7  ;;  %v435_v61 = vmul.u32 128, %v434_v59 }
  0x1f   : > { %736 = vmatpush3.bf16.msra.mxu1 %v735_v13  ;;  %v280_v30 = vld [vmem:[%s1091_s2 + $0x40] sm:$0xff]  ;;  %468 = vst [vmem:[#allocation2 - $0x7] sm:$0x80] %v249_v25  ;;  %v283_v37 = vld [vmem:[%s1091_s2 + $0x58] sm:$0xff]  ;;  %v266_v38 = vld [vmem:[%s1090_s1 + $0x50] sm:$0xff] }
  0x20   : > { %760 = vmatpush3.bf16.msra.mxu0 %v759_v14  ;;  %737 = vmatprep.subr.bf16.mxu1 %v879_v4  ;;  %v264_v32 = vld [vmem:[%s1090_s1 + $0x40] sm:$0xff]  ;;  %v744_v34 = vpack.c.bf16 %v281_v31, %v280_v30  ;;  %v267_v39 = vld [vmem:[%s1090_s1 + $0x58] sm:$0xff]  ;;  %v747_v40 = vpack.c.bf16 %v283_v37, %v282_v36  ;;  %v285_v43 = vld [vmem:[%s1091_s2 + $0x68] sm:$0xff]  ;;  %v255_v55 = vsel %vm254_vm1, %v250_v27, %v252_v53 }
  0x21   : > { %761 = vmatprep.subr.bf16.mxu0 %v879_v4  ;;  %442 = vadd.xlane.f32.xlu0 %v441_v28  ;;  %v768_v35 = vpack.c.bf16 %v265_v33, %v264_v32  ;;  %v771_v41 = vpack.c.bf16 %v267_v39, %v266_v38  ;;  %v284_v42 = vld [vmem:[%s1091_s2 + $0x60] sm:$0xff]  ;;  %v269_v45 = vld [vmem:[%s1090_s1 + $0x68] sm:$0xff]  ;;  %v286_v48 = vld [vmem:[%s1091_s2 + $0x70] sm:$0xff]  ;;  %v436_v62 = vadd.s32 %v435_v61, %v431_v60 }
  0x22   : > { %v268_v44 = vld [vmem:[%s1090_s1 + $0x60] sm:$0xff]  ;;  %v750_v46 = vpack.c.bf16 %v285_v43, %v284_v42  ;;  %v287_v49 = vld [vmem:[%s1091_s2 + $0x78] sm:$0xff]  ;;  %v270_v50 = vld [vmem:[%s1090_s1 + $0x70] sm:$0xff] }
  0x23   : > { %739 = vmatpush3.bf16.msra.mxu1 %v738_v19  ;;  %v774_v47 = vpack.c.bf16 %v269_v45, %v268_v44  ;;  %v271_v51 = vld [vmem:[%s1090_s1 + $0x78] sm:$0xff]  ;;  %v753_v52 = vpack.c.bf16 %v287_v49, %v286_v48  ;;  %vm437_vm2 = vcmp.lt.s32.totalorder %v436_v62, 2000 }
  0x24   : > { %763 = vmatpush3.bf16.msra.mxu0 %v762_v20  ;;  %740 = vmatprep.subr.bf16.mxu1 %v879_v4  ;;  %v777_v54 = vpack.c.bf16 %v271_v51, %v270_v50 }
  0x25   : > { %764 = vmatprep.subr.bf16.mxu0 %v879_v4 }
  0x27   : > { %742 = vmatpush3.bf16.msra.mxu1 %v741_v26 }
  0x28   : > { %766 = vmatpush3.bf16.msra.mxu0 %v765_v29  ;;  %743 = vmatprep.subr.bf16.mxu1 %v879_v4 }
  0x29   : > { %767 = vmatprep.subr.bf16.mxu0 %v879_v4 }
  0x2b   : > { %745 = vmatpush3.bf16.msra.mxu1 %v744_v34 }
  0x2c   : > { %769 = vmatpush3.bf16.msra.mxu0 %v768_v35  ;;  %746 = vmatprep.subr.bf16.mxu1 %v879_v4 }
  0x2d   : > { %770 = vmatprep.subr.bf16.mxu0 %v879_v4 }
  0x2f   : > { %748 = vmatpush3.bf16.msra.mxu1 %v747_v40 }
  0x30   : > { %772 = vmatpush3.bf16.msra.mxu0 %v771_v41  ;;  %749 = vmatprep.subr.bf16.mxu1 %v879_v4 }
  0x31   : > { %773 = vmatprep.subr.bf16.mxu0 %v879_v4 }
  0x33   : > { %751 = vmatpush3.bf16.msra.mxu1 %v750_v46 }
  0x34   : > { %775 = vmatpush3.bf16.msra.mxu0 %v774_v47  ;;  %752 = vmatprep.subr.bf16.mxu1 %v879_v4 }
  0x35   : > { %776 = vmatprep.subr.bf16.mxu0 %v879_v4 }
  0x37   : > { %754 = vmatpush3.bf16.msra.mxu1 %v753_v52 }
  0x38   : > { %778 = vmatpush3.bf16.msra.mxu0 %v777_v54 }
  0x3a   : > { %694 = vmatmul.mubr.f32.vlgmr.msra.gmra.mrb[0].mxu1 %v255_v55 }
  0x3b   : > { %729 = vmatmul.mubr.f32.vlgmr.msra.gmra.mrb[0].mxu0 %v249_v25 }
  0xae   : > { %v443_v4 = vpop.xlane.xlu0 %442 }
  0xaf   : > { %v444_v7 = vrot.slane %v443_v4, 4 }
  0xb1   : > { %v445_v8 = vadd.f32 %v444_v7, %v443_v4 }
  0xb3   : > { %v446_v9 = vrot.slane %v445_v8, 2 }
  0xb5   : > { %v447_v10 = vadd.f32 %v446_v9, %v445_v8 }
  0xb7   : > { %v448_v11 = vrot.slane %v447_v10, 1 }
  0xb9   : > { %v449_v12 = vadd.f32 %v448_v11, %v447_v10 }
  0xbb   : > { %780 = vpush %v449_v12 }
  0xec   : > { %s781_s5 = spop %780 }
  0xed   : > { %s451_s7 = sadd.f32 %s781_s5, %s440_s30 }
  0xef   : > { %453 = sst [smem:[#allocation3]] %s451_s7 }
  0xf0   : > { %s473_s12 = sld [smem:[#allocation3]] (!%p623_p8) }
 0x10d   : > { %v354_v63 = vpop.f32.mrb[0].mxu1 }
 0x10e   : > { %v424_v0 = vpop.f32.mrb[0].mxu0  ;;  %v695_v1 = vpop.f32.mrb[1].mxu1 }
 0x10f   : > { %v425_v2 = vadd.f32 %v424_v0, %v354_v63  ;;  %v730_v3 = vpop.f32.mrb[1].mxu0 }
 0x111   : > { %v438_v5 = vsel %vm437_vm2, %v425_v2, 0.0 }
 0x112   : > { %v455_v6 = vmul.f32 %v438_v5, %v438_v5  ;;  %439 = vst [vmem:[%s954_s9] sm:$0xff] %v438_v5  ;;  %s622_s9 = sld [smem:[#allocation3 + $0x1]] }
 0x114   : > { %456 = vadd.xlane.f32.xlu0 %v455_v6 }
 0x1a1   : > { %v457_v13 = vpop.xlane.xlu0 %456 }
 0x1a2   : > { %v458_v14 = vrot.slane %v457_v13, 4 }
 0x1a4   : > { %v459_v15 = vadd.f32 %v458_v14, %v457_v13 }
 0x1a6   : > { %v460_v16 = vrot.slane %v459_v15, 2 }
 0x1a8   : > { %v461_v17 = vadd.f32 %v460_v16, %v459_v15 }
 0x1aa   : > { %v462_v18 = vrot.slane %v461_v17, 1 }
 0x1ac   : > { %v463_v19 = vadd.f32 %v462_v18, %v461_v17 }
 0x1ae   : > { %782 = vpush %v463_v19 }
 0x1dc   : > { %472 = sbr.rel (%p623_p8) target bundleno = 622 (0x26e), region = 40 }
 0x1df   : > { %s783_s8 = spop %782 }
 0x1e0   : > { %s465_s10 = sadd.f32 %s783_s8, %s622_s9 }
 0x1e2   : > { %467 = sst [smem:[#allocation3 + $0x1]] %s465_s10 }
 0x1e3   : > { %s624_s11 = sld [smem:[#allocation3 + $0x1]] }
 0x1e9   : > { %v476_v20 = vstv %s624_s11  ;;  %p475_p9 = scmp.gt.f32.partialorder %s624_s11, 0.0 }
 0x1ea   : > { %833 = vrcp.f32 %v476_v20 }
 0x1f4   : > { %v834_v21 = vpop.eup %833 }
 0x1f5   : > { %784 = vpush %v834_v21 }
 0x226   : > { %s785_s6 = spop %784 }
 0x227   : > { %s479_s13 = smul.f32 %s785_s6, %s473_s12 }
 0x229   : > { %v480_v22 = vstv %s479_s13 }
 0x22a   : > { %835 = vrsqrt.f32 %v480_v22  ;;  %vm483_vm3 = vcmp.eq.f32.partialorder %v480_v22, inf  ;;  %v486_v25 = vand.u32 2147483648, %v480_v22  ;;  %vm485_vm4 = vcmp.eq.f32.partialorder %v480_v22, 0.0 }
 0x234   : > { %v836_v23 = vpop.eup %835 }
 0x235   : > { %v482_v24 = vmul.f32 %v836_v23, %v480_v22 }
 0x237   : > { %v484_v26 = vsel %vm483_vm3, %v480_v22, %v482_v24 }
 0x238   : > { %v487_v27 = vsel %vm485_vm4, %v486_v25, %v484_v26 }
 0x239   : > { %786 = vpush %v487_v27 }
 0x26a   : > { %s787_s15 = spop %786 }
 0x26b   : > { %s1107_s15 = smov (!%p475_p9, %s787_s15), 0.0 }
 0x26c   : > { %v490_v28 = vstv %s1107_s15 }
 0x26d   : > { %492 = vst [vmem:[%s944_s28] sm:$0xff] %v490_v28 }
 0x26e PF: > { %s15_s19 = sadd.s32 1, %s875_s19   ;;  %s1094_s15 = smov %s867_s17 }
 0x26f   : > { %p12_p10 = scmp.ge.s32.totalorder %s15_s19, 6   ;;  %s1095_s16 = smov %s871_s18 }
 0x270   : > { %s1096_s17 = smov %s1099_s20  ;;  %s1097_s18 = smov %s1103_s21 }
 0x271   :  { %14 = sbr.rel (!%p12_p10) target bundleno = 3 (0x3), region = 86 }

</bundles_post_ra>
